<compile_context>
chip_gen: v7x
topology: tpu7x:2x2x1
jax: 0.10.0
libtpu: 0.0.40
codegen_flags: <defaults>
</compile_context>

<pallas_src>
import jax
import jax.numpy as jnp
from jax.experimental import pallas as pl
from jax.experimental.pallas import tpu as pltpu


def music_prefs_kernel(idx_ref, tab_ref, w2_ref, b2_ref, out_ref):
    # idx_ref : SMEM (B,)      int32  genre indices
    # tab_ref : VMEM (V, 128)  f32    fused table: E @ W1 + b1
    # w2_ref  : VMEM (128, Vp) bf16   fc2 weight, zero-padded lanes >= V
    # b2_ref  : VMEM (1, Vp)   f32    fc2 bias, pad lanes = -1e30
    # out_ref : VMEM (B, Vp)   f32    softmax probabilities (pad lanes -> 0)
    B = out_ref.shape[0]

    # Fused embedding + fc1 (+ b1): gather one precomputed row per example,
    # assembled directly in vregs (no scratch round-trip).  B is tiny, so the
    # Python loop fully unrolls at trace time.
    rows = [tab_ref[pl.ds(idx_ref[b], 1), :] for b in range(B)]
    h = jnp.concatenate(rows, axis=0)                     # (B, 128) f32

    h = jnp.maximum(h, 0.0)                               # ReLU, f32 on the VPU

    # fc2 on the MXU: bf16 operands, f32 accumulation.  Padded weight columns
    # are zero and padded bias lanes are -1e30, so padded logits are -1e30.
    logits = jnp.dot(h.astype(jnp.bfloat16), w2_ref[...],
                     preferred_element_type=jnp.float32) + b2_ref[...]

    # softmax(dim=1): max-subtracted; padded lanes underflow to exactly 0, so
    # the reduction over Vp lanes equals the reduction over the V real lanes.
    m = jnp.max(logits, axis=-1, keepdims=True)
    e = jnp.exp(logits - m)
    denom = jnp.sum(e, axis=-1, keepdims=True)
    out_ref[...] = e * pl.reciprocal(denom, approx=False)


def _fused_table(emb_table, w1, b1):
    # (V, 16) @ (16, 128) + (1, 128) -> (V, 128).  Weights are static at
    # inference time, so this is done once on the XLA side at high precision.
    return jnp.dot(emb_table, w1, precision=jax.lax.Precision.HIGHEST,
                   preferred_element_type=jnp.float32) + b1


def music_prefs_forward(idx, emb_table, w1, b1, w2, b2):
    B = idx.shape[0]
    V, _ = emb_table.shape
    H = w1.shape[1]
    Vp = pl.cdiv(V, 128) * 128                            # lane-dense output width

    # Algebraic fusion of embedding + fc1 (+ b1) into one gatherable table.
    tab = _fused_table(emb_table, w1, b1)                 # (V, H) f32

    # Pad fc2 to a lane-dense output block.  Zero weight columns + (-1e30)
    # bias lanes make the padded logits irrelevant to the softmax.
    w2_p = jnp.zeros((H, Vp), jnp.bfloat16).at[:, :V].set(w2.astype(jnp.bfloat16))
    b2_p = jnp.full((1, Vp), -1e30, jnp.float32).at[:, :V].set(
        b2.reshape(1, V).astype(jnp.float32))

    # Guard against out-of-range indices (would silently gather padding rows).
    idx_i32 = jnp.clip(idx.astype(jnp.int32), 0, V - 1)

    out_p = pl.pallas_call(
        music_prefs_kernel,
        out_shape=jax.ShapeDtypeStruct((B, Vp), jnp.float32),
        in_specs=[
            pl.BlockSpec(memory_space=pltpu.MemorySpace.SMEM),   # indices
            pl.BlockSpec(memory_space=pltpu.MemorySpace.VMEM),   # fused table
            pl.BlockSpec(memory_space=pltpu.MemorySpace.VMEM),   # W2 (bf16, padded)
            pl.BlockSpec(memory_space=pltpu.MemorySpace.VMEM),   # b2 (padded)
        ],
        out_specs=pl.BlockSpec(memory_space=pltpu.MemorySpace.VMEM),
    )(idx_i32, tab, w2_p, b2_p)

    return out_p[:, :V]


def reference_forward_f32(idx, emb_table, w1, b1, w2, b2):
    # Pure-f32 PyTorch-equivalent forward.
    h = jnp.maximum(emb_table[idx] @ w1 + b1, 0.0)
    return jax.nn.softmax(h @ w2 + b2, axis=1)


def reference_forward_matched(idx, emb_table, w1, b1, w2, b2):
    # Same math as the kernel: fused f32 table, bf16 MXU operands for fc2.
    h = jnp.maximum(_fused_table(emb_table, w1, b1)[idx], 0.0)
    logits = jnp.dot(h.astype(jnp.bfloat16), w2.astype(jnp.bfloat16),
                     preferred_element_type=jnp.float32) + b2
    return jax.nn.softmax(logits, axis=1)


if __name__ == "__main__":
    num_genres = 8     # small synthetic "len(music_genres)"
    emb_dim = 16
    hidden = 128
    batch = 8

    key = jax.random.PRNGKey(0)
    k_emb, k_w1, k_b1, k_w2, k_b2, k_idx = jax.random.split(key, 6)

    # Deterministic synthetic parameters (shapes match nn.Module's __init__);
    # linear weights stored as (in_features, out_features).
    emb_table = jax.random.normal(k_emb, (num_genres, emb_dim), jnp.float32)
    w1 = jax.random.normal(k_w1, (emb_dim, hidden), jnp.float32) * 0.1
    b1 = jax.random.normal(k_b1, (1, hidden), jnp.float32) * 0.1
    w2 = jax.random.normal(k_w2, (hidden, num_genres), jnp.float32) * 0.1
    b2 = jax.random.normal(k_b2, (1, num_genres), jnp.float32) * 0.1

    # Input: batch of genre indices.
    idx = jax.random.randint(k_idx, (batch,), 0, num_genres, jnp.int32)

    out = music_prefs_forward(idx, emb_table, w1, b1, w2, b2)
    out = jax.block_until_ready(out)
    assert out.shape == (batch, num_genres)

    # Tight check against a reference applying the same bf16 MXU casts.
    ref_matched = reference_forward_matched(idx, emb_table, w1, b1, w2, b2)
    assert jnp.allclose(out, ref_matched, atol=1e-4, rtol=1e-4)

    # Semantics check against the pure-f32 PyTorch-equivalent forward
    # (looser tolerance accounts only for bf16 fc2 operands).
    ref_f32 = reference_forward_f32(idx, emb_table, w1, b1, w2, b2)
    assert jnp.allclose(out, ref_f32, atol=2e-2, rtol=0)

    # Rows are valid probability distributions.
    assert jnp.allclose(jnp.sum(out, axis=1), 1.0, atol=1e-5)

    print("KERNEL_OK")
</pallas_src>

<mosaic_0001>
module attributes {stable_mosaic.version = 11 : i64} {
  func.func @music_prefs_kernel(%arg0: memref<8xi32, #tpu.memory_space<smem>>, %arg1: memref<8x128xf32, #tpu.memory_space<vmem>>, %arg2: memref<128x128xbf16, #tpu.memory_space<vmem>>, %arg3: memref<1x128xf32, #tpu.memory_space<vmem>>, %arg4: memref<8x128xf32, #tpu.memory_space<vmem>>) attributes {dimension_semantics = [], scalar_prefetch = 0 : i64, scratch_operands = 0 : i64, tpu.core_type = #tpu.core_type<tc>} {
    %c0 = arith.constant 0 : index
    %0 = memref.load %arg0[%c0] : memref<8xi32, #tpu.memory_space<smem>>
    %1 = arith.index_cast %0 : i32 to index
    %c0_0 = arith.constant 0 : index
    %2 = vector.load %arg1[%1, %c0_0] : memref<8x128xf32, #tpu.memory_space<vmem>>, vector<1x128xf32>
    %c1 = arith.constant 1 : index
    %3 = memref.load %arg0[%c1] : memref<8xi32, #tpu.memory_space<smem>>
    %4 = arith.index_cast %3 : i32 to index
    %c0_1 = arith.constant 0 : index
    %5 = vector.load %arg1[%4, %c0_1] : memref<8x128xf32, #tpu.memory_space<vmem>>, vector<1x128xf32>
    %c2 = arith.constant 2 : index
    %6 = memref.load %arg0[%c2] : memref<8xi32, #tpu.memory_space<smem>>
    %7 = arith.index_cast %6 : i32 to index
    %c0_2 = arith.constant 0 : index
    %8 = vector.load %arg1[%7, %c0_2] : memref<8x128xf32, #tpu.memory_space<vmem>>, vector<1x128xf32>
    %c3 = arith.constant 3 : index
    %9 = memref.load %arg0[%c3] : memref<8xi32, #tpu.memory_space<smem>>
    %10 = arith.index_cast %9 : i32 to index
    %c0_3 = arith.constant 0 : index
    %11 = vector.load %arg1[%10, %c0_3] : memref<8x128xf32, #tpu.memory_space<vmem>>, vector<1x128xf32>
    %c4 = arith.constant 4 : index
    %12 = memref.load %arg0[%c4] : memref<8xi32, #tpu.memory_space<smem>>
    %13 = arith.index_cast %12 : i32 to index
    %c0_4 = arith.constant 0 : index
    %14 = vector.load %arg1[%13, %c0_4] : memref<8x128xf32, #tpu.memory_space<vmem>>, vector<1x128xf32>
    %c5 = arith.constant 5 : index
    %15 = memref.load %arg0[%c5] : memref<8xi32, #tpu.memory_space<smem>>
    %16 = arith.index_cast %15 : i32 to index
    %c0_5 = arith.constant 0 : index
    %17 = vector.load %arg1[%16, %c0_5] : memref<8x128xf32, #tpu.memory_space<vmem>>, vector<1x128xf32>
    %c6 = arith.constant 6 : index
    %18 = memref.load %arg0[%c6] : memref<8xi32, #tpu.memory_space<smem>>
    %19 = arith.index_cast %18 : i32 to index
    %c0_6 = arith.constant 0 : index
    %20 = vector.load %arg1[%19, %c0_6] : memref<8x128xf32, #tpu.memory_space<vmem>>, vector<1x128xf32>
    %c7 = arith.constant 7 : index
    %21 = memref.load %arg0[%c7] : memref<8xi32, #tpu.memory_space<smem>>
    %22 = arith.index_cast %21 : i32 to index
    %c0_7 = arith.constant 0 : index
    %23 = vector.load %arg1[%22, %c0_7] : memref<8x128xf32, #tpu.memory_space<vmem>>, vector<1x128xf32>
    %24 = tpu.concatenate %2, %5, %8, %11, %14, %17, %20, %23 in 0 : vector<1x128xf32>, vector<1x128xf32>, vector<1x128xf32>, vector<1x128xf32>, vector<1x128xf32>, vector<1x128xf32>, vector<1x128xf32>, vector<1x128xf32> -> vector<8x128xf32>
    %cst = arith.constant 0.000000e+00 : f32
    %25 = vector.broadcast %cst : f32 to vector<8x128xf32>
    %26 = arith.maximumf %24, %25 : vector<8x128xf32>
    %27 = arith.truncf %26 : vector<8x128xf32> to vector<8x128xbf16>
    %c0_8 = arith.constant 0 : index
    %c0_9 = arith.constant 0 : index
    %28 = vector.load %arg2[%c0_8, %c0_9] : memref<128x128xbf16, #tpu.memory_space<vmem>>, vector<128x128xbf16>
    %cst_10 = arith.constant dense<0.000000e+00> : vector<8x128xf32>
    %29 = tpu.matmul %27, %28, %cst_10 {dimension_numbers = #tpu.dot_dimension_numbers<[1], [0], [0], [1], [0, 0, 1, 1], [], []>} : vector<8x128xbf16>, vector<128x128xbf16>, vector<8x128xf32> -> vector<8x128xf32>
    %c0_11 = arith.constant 0 : index
    %c0_12 = arith.constant 0 : index
    %30 = vector.load %arg3[%c0_11, %c0_12] : memref<1x128xf32, #tpu.memory_space<vmem>>, vector<1x128xf32>
    %31 = vector.broadcast %30 : vector<1x128xf32> to vector<8x128xf32>
    %32 = arith.addf %29, %31 : vector<8x128xf32>
    %cst_13 = arith.constant dense<0xFF800000> : vector<8xf32>
    %33 = vector.multi_reduction <maximumf>, %32, %cst_13 [1] : vector<8x128xf32> to vector<8xf32>
    %34 = vector.shape_cast %33 : vector<8xf32> to vector<8x1xf32>
    %35 = vector.broadcast %34 : vector<8x1xf32> to vector<8x128xf32>
    %36 = arith.subf %32, %35 : vector<8x128xf32>
    %37 = math.exp %36 : vector<8x128xf32>
    %cst_14 = arith.constant dense<0.000000e+00> : vector<8xf32>
    %38 = vector.multi_reduction <add>, %37, %cst_14 [1] : vector<8x128xf32> to vector<8xf32>
    %39 = vector.shape_cast %38 : vector<8xf32> to vector<8x1xf32>
    %40 = tpu.reciprocal %39 : vector<8x1xf32> -> vector<8x1xf32>
    %41 = vector.broadcast %40 : vector<8x1xf32> to vector<8x128xf32>
    %42 = arith.mulf %37, %41 : vector<8x128xf32>
    %c0_15 = arith.constant 0 : index
    %c0_16 = arith.constant 0 : index
    %43 = vector.load %arg4[%c0_15, %c0_16] : memref<8x128xf32, #tpu.memory_space<vmem>>, vector<8x128xf32>
    tpu.vector_store %arg4[%c0_15, %c0_16], %42 {strides = array<i32>} : memref<8x128xf32, #tpu.memory_space<vmem>>, vector<8x128xf32>,
    return
  }
}

</mosaic_0001>

<bundles_post_ra>
// kernel: tpu_custom_call.1
= control target key start
LH: loop header
LB: loop body
LE: loop exit
PB: predicated region body
PF: predicated region fallthrough
CT: control target
= control target key end

     0   :  { %9 = vsyncpa [#allocation5], 0  ;;  %s506_s0 = inlined_call_operand.hbm [shape: s32[8], index: 0, kind: input, shape index: {}]   ;;  %s507_s1 = inlined_call_operand.hbm [shape: f32[8,128], index: 1, kind: input, shape index: {}]   ;;  %s508_s2 = inlined_call_operand.hbm [shape: bf16[128,128], index: 2, kind: input, shape index: {}]   ;;  %s509_s3 = inlined_call_operand.vmem [shape: f32[1,128], index: 3, kind: input, shape index: {}]   ;;  %s510_s4 = inlined_call_operand.hbm [shape: f32[8,128], index: 4, kind: output, shape index: {}]  }
   0x1   :  { %10 = vsyncpa [#allocation3], 0 }
   0x2   :  { %11 = vsyncpa [#allocation8], 0 }
   0x3   :  { %12 = vsyncpa [#allocation4], 0  ;;  %s328_s17 = scalar_lea.hbm %s506_s0, 16 }
   0x4   :  { %p329_p0 = scmp.ne.s32.totalorder %s506_s0, %s328_s17  ;;  %p332_p1 = scmp.lt.u32.totalorder %s328_s17, %s506_s0 }
   0x6   :  { %p334_p2 = pnand %p332_p1, %p329_p0 }
   0x8   :  { %337 = shalt.err (!%p334_p2)
}
   0x9   :  { %s412_s22 = smov [#allocation2]   ;;  %s413_s25 = smov [#allocation6]  }
   0xa   :  { %20 = dma.hbm_to_smem %s506_s0, 16, %s412_s22, [#allocation5]  }
   0xb   :  { %s27_s26 = sshll.u32 %s413_s25, 4  ;;  %s414_s27 = smov [#allocation7]   ;;  %s28_s26 = int_to_ptr.vmem [resolvable:$true] %s27_s26 }
   0xc   :  { %s36_s28 = sshll.u32 %s414_s27, 4  ;;  %s338_s5 = scalar_lea.hbm %s507_s1, 128  ;;  %s37_s28 = int_to_ptr.vmem [resolvable:$true] %s36_s28 }
   0xd   :  { %p339_p3 = scmp.ne.s32.totalorder %s507_s1, %s338_s5  ;;  %p342_p4 = scmp.lt.u32.totalorder %s338_s5, %s507_s1 }
   0xf   :  { %p344_p5 = pnand %p342_p4, %p339_p3 }
  0x11   :  { %347 = shalt.err (!%p344_p5)
}
  0x12   :  { %s348_s0 = scalar_lea.vmem %s28_s26, 128  ;;  %p353_p7 = scmp.lt.s32.totalorder %s28_s26, %s28_s26 }
  0x13   :  { %p349_p6 = scmp.ne.s32.totalorder %s28_s26, %s348_s0  ;;  %p354_p8 = scmp.lt.s32.totalorder %s348_s0, %s348_s0 }
  0x15   :  { %p355_p9 = por %p354_p8, %p353_p7 }
  0x17   :  { %p356_p10 = pnand %p355_p9, %p349_p6 }
  0x19   :  { %359 = shalt.err (!%p356_p10)
}
  0x1a   :  { %30 = dma.hbm_to_vmem [thread:$0]  %s507_s1, 128, %s28_s26, [#allocation3]  }
  0x1b   :  { %s360_s14 = scalar_lea.hbm %s508_s2, 1024 }
  0x1c   :  { %p361_p11 = scmp.ne.s32.totalorder %s508_s2, %s360_s14  ;;  %p364_p12 = scmp.lt.u32.totalorder %s360_s14, %s508_s2 }
  0x1e   :  { %p366_p13 = pnand %p364_p12, %p361_p11 }
  0x20   :  { %369 = shalt.err (!%p366_p13)
}
  0x21   :  { %s370_s19 = scalar_lea.vmem %s37_s28, 1024  ;;  %p375_p1 = scmp.lt.s32.totalorder %s37_s28, %s37_s28 }
  0x22   :  { %p371_p0 = scmp.ne.s32.totalorder %s37_s28, %s370_s19  ;;  %p376_p2 = scmp.lt.s32.totalorder %s370_s19, %s370_s19 }
  0x24   :  { %p377_p3 = por %p376_p2, %p375_p1 }
  0x26   :  { %p378_p4 = pnand %p377_p3, %p371_p0 }
  0x28   :  { %381 = shalt.err (!%p378_p4)
}
  0x29   :  { %s415_s1 = smov 64   ;;  %s416_s20 = smov 4  }
  0x2a   :  { %42 = dma.hbm_to_vmem [thread:$0]  %s508_s2, 1024, %s37_s28, [#allocation8], %s415_s1, %s415_s1, %s416_s20  }
  0x2b   :  { %404 = dma.done.wait [#allocation5], 16  }
  0x2c   :  { %405 = vsyncadd [#allocation5], 4294967280 }
  0x2d   :  { %406 = dma.done.wait [#allocation3], 128  }
  0x2e   :  { %407 = vsyncadd [#allocation3], 4294967168 }
  0x2f   :  { %408 = dma.done.wait [#allocation8], 1024  }
  0x30   :  { %409 = vsyncadd [#allocation8], 4294966272 }
  0x31   :  { %54 = sfence }
  0x32   :  { %v316_v0 = vld [vmem:[#allocation7] sm:$0xff]   ;;  %v417_v1 = vmov 0.0   ;;  %v317_v2 = vld [vmem:[#allocation7 + $0x8] sm:$0xff]   ;;  %vm418_vm0 = vmmov 0   ;;  %v318_v3 = vld [vmem:[#allocation7 + $0x10] sm:$0xff]   ;;  %s56_s2 = sld [smem:[#allocation2]] }
  0x33   :  { %288 = vmatprep.subr.bf16.mxu0 %v417_v1  ;;  %304 = vmatprep.mubr.msk.bf16.mxu0 %vm418_vm0, %v417_v1  ;;  %s263_s23 = sld [smem:[#allocation2 + $0x1]]  ;;  %s264_s24 = sld [smem:[#allocation2 + $0x2]]  ;;  %v319_v4 = vld [vmem:[#allocation7 + $0x18] sm:$0xff]   ;;  %v320_v5 = vld [vmem:[#allocation7 + $0x20] sm:$0xff]   ;;  %vm101_vm1 = vcmask 1040384   ;;  %v321_v12 = vld [vmem:[#allocation7 + $0x28] sm:$0xff]  }
  0x34   :  { %289 = vmatpush3.bf16.msra.mxu0 %v316_v0  ;;  %s265_s25 = sld [smem:[#allocation2 + $0x3]]  ;;  %s266_s26 = sld [smem:[#allocation2 + $0x4]]  ;;  %vm103_vm2 = vcmask 1041408   ;;  %vm105_vm3 = vcmask 1042432   ;;  %vm107_vm4 = vcmask 1043456   ;;  %vm109_vm5 = vcmask 1044480  }
  0x35   :  { %290 = vmatprep.subr.bf16.mxu0 %v417_v1  ;;  %s267_s27 = sld [smem:[#allocation2 + $0x5]]  ;;  %s268_s28 = sld [smem:[#allocation2 + $0x6]]  ;;  %v322_v23 = vld [vmem:[#allocation7 + $0x30] sm:$0xff]   ;;  %vm111_vm6 = vcmask 1045504   ;;  %vm113_vm7 = vcmask 1046528   ;;  %v323_v29 = vld [vmem:[#allocation7 + $0x38] sm:$0xff]  }
  0x36   :  { %s269_s29 = sld [smem:[#allocation2 + $0x7]]  ;;  %v270_v33 = vld [vmem:[%s509_s3] ss:$0 sm:$0xff]  ;;  %s419_s13 = smov [#allocation9]  }
  0x37   :  { %s244_s14 = sshll.u32 %s419_s13, 4  ;;  %s245_s14 = int_to_ptr.vmem [resolvable:$true] %s244_s14 }
  0x38   :  { %291 = vmatpush3.bf16.msra.mxu0 %v317_v2  ;;  %s57_s30 = scalar_lea.vmem [#allocation6], %s56_s2  ;;  %s382_s3 = scalar_lea.vmem %s245_s14, 128 }
  0x39   :  { %292 = vmatprep.subr.bf16.mxu0 %v417_v1  ;;  %v58_v6 = vld [vmem:[%s57_s30] sm:$0x1]  ;;  %s60_s5 = scalar_lea.vmem [#allocation6], %s263_s23  ;;  %s63_s6 = scalar_lea.vmem [#allocation6], %s264_s24 }
  0x3a   :  { %v61_v7 = vld [vmem:[%s60_s5] sm:$0x1]  ;;  %s66_s7 = scalar_lea.vmem [#allocation6], %s265_s25  ;;  %s69_s8 = scalar_lea.vmem [#allocation6], %s266_s26 }
  0x3b   :  { %v64_v8 = vld [vmem:[%s63_s6] sm:$0x1]  ;;  %s72_s9 = scalar_lea.vmem [#allocation6], %s267_s27  ;;  %s75_s0 = scalar_lea.vmem [#allocation6], %s268_s28  ;;  %v81_v14 = vrot.slane %v61_v7, 7 }
  0x3c   :  { %293 = vmatpush3.bf16.msra.mxu0 %v318_v3  ;;  %v67_v9 = vld [vmem:[%s66_s7] sm:$0x1]  ;;  %v84_v15 = vrot.slane %v64_v8, 6  ;;  %s78_s10 = scalar_lea.vmem [#allocation6], %s269_s29  ;;  %p383_p5 = scmp.ne.s32.totalorder %s245_s14, %s382_s3 }
  0x3d   :  { %294 = vmatprep.subr.bf16.mxu0 %v417_v1  ;;  %v70_v10 = vld [vmem:[%s69_s8] sm:$0x1]  ;;  %v87_v17 = vrot.slane %v67_v9, 5  ;;  %v102_v20 = vsel %vm101_vm1, %v58_v6, %v81_v14  ;;  %p387_p6 = scmp.lt.s32.totalorder %s245_s14, %s245_s14  ;;  %p388_p7 = scmp.lt.s32.totalorder %s382_s3, %s382_s3 }
  0x3e   :  { %v73_v11 = vld [vmem:[%s72_s9] sm:$0x1]  ;;  %v90_v18 = vrot.slane %v70_v10, 4  ;;  %v104_v22 = vsel %vm103_vm2, %v102_v20, %v84_v15 }
  0x3f   :  { %v76_v13 = vld [vmem:[%s75_s0] sm:$0x1]  ;;  %v93_v19 = vrot.slane %v73_v11, 3  ;;  %v106_v25 = vsel %vm105_vm3, %v104_v22, %v87_v17  ;;  %p389_p8 = por %p388_p7, %p387_p6 }
  0x40   :  { %295 = vmatpush3.bf16.msra.mxu0 %v319_v4  ;;  %v79_v16 = vld [vmem:[%s78_s10] sm:$0x1]  ;;  %v96_v21 = vrot.slane %v76_v13, 2  ;;  %v108_v26 = vsel %vm107_vm4, %v106_v25, %v90_v18 }
  0x41   :  { %296 = vmatprep.subr.bf16.mxu0 %v417_v1  ;;  %v99_v24 = vrot.slane %v79_v16, 1  ;;  %v110_v27 = vsel %vm109_vm5, %v108_v26, %v93_v19  ;;  %p390_p9 = pnand %p389_p8, %p383_p5 }
  0x42   :  { %v112_v28 = vsel %vm111_vm6, %v110_v27, %v96_v21 }
  0x43   :  { %v114_v30 = vsel %vm113_vm7, %v112_v28, %v99_v24 }
  0x44   :  { %297 = vmatpush3.bf16.msra.mxu0 %v320_v5  ;;  %v115_v31 = vmax.f32 %v114_v30, 0.0 }
  0x45   :  { %298 = vmatprep.subr.bf16.mxu0 %v417_v1 }
  0x46   :  { %v116_v32 = vpack.c.bf16 %v115_v31, %v115_v31 }
  0x48   :  { %299 = vmatpush3.bf16.msra.mxu0 %v321_v12 }
  0x49   :  { %300 = vmatprep.subr.bf16.mxu0 %v417_v1 }
  0x4c   :  { %301 = vmatpush3.bf16.msra.mxu0 %v322_v23 }
  0x4d   :  { %302 = vmatprep.subr.bf16.mxu0 %v417_v1 }
  0x50   :  { %303 = vmatpush3.bf16.msra.mxu0 %v323_v29 }
  0x53   :  { %305 = vmatmul.mubr.bf16.vlgmr.msra.gmra.mrb[0].mxu0 %v116_v32 }
 0x126   :  { %v222_v34 = vpop.f32.mrb[0].mxu0 }
 0x127   :  { %v223_v35 = vadd.f32 %v270_v33, %v222_v34  ;;  %v306_v36 = vpop.f32.mrb[1].mxu0 }
 0x128   :  { %v225_v37 = vpop.f32.mrb[2].mxu0 }
 0x129   :  { %228 = vmax.xlane.f32.xlu0 %v223_v35  ;;  %v307_v38 = vpop.f32.mrb[3].mxu0 }
 0x1b6   :  { %v229_v39 = vpop.xlane.xlu0 %228 }
 0x1b7   :  { %v230_v40 = vsub.f32 %v223_v35, %v229_v39 }
 0x1b9   :  { %v231_v41 = vmul.f32 1.442695, %v230_v40 }
 0x1bb   :  { %324 = vpow2.f32 %v231_v41 }
 0x1c5   :  { %v325_v42 = vpop.eup %324 }
 0x1c6   :  { %233 = vadd.xlane.f32.xlu0 %v325_v42 }
 0x253   :  { %v234_v43 = vpop.xlane.xlu0 %233 }
 0x254   :  { %326 = vrcp.f32 %v234_v43 }
 0x25e   :  { %v327_v44 = vpop.eup %326 }
 0x25f   :  { %v236_v45 = vmul.f32 %v327_v44, %v325_v42 }
 0x261   :  { %237 = vst [vmem:[#allocation9] sm:$0xff] %v236_v45 }
 0x262   :  { %393 = shalt.err (!%p390_p9)
}
 0x263   :  { %s394_s17 = scalar_lea.hbm %s510_s4, 128 }
 0x264   :  { %p395_p10 = scmp.ne.s32.totalorder %s510_s4, %s394_s17  ;;  %p398_p11 = scmp.lt.u32.totalorder %s394_s17, %s510_s4 }
 0x266   :  { %p400_p12 = pnand %p398_p11, %p395_p10 }
 0x268   :  { %403 = shalt.err (!%p400_p12)
}
 0x269   :  { %247 = dma.vmem_to_hbm [thread:$0]  %s245_s14, 128, %s510_s4, [#allocation4]  }
 0x26a   :  { %410 = dma.done.wait [#allocation4], 128  }
 0x26b   :  { %411 = vsyncadd [#allocation4], 4294967168 }
 0x26c   :  { %251 = vsyncpa [#allocation3], 1 }
 0x26d   :  { %252 = vsyncpa [#allocation8], 1 }
 0x26e   :  { %253 = vsyncpa [#allocation4], 1 }
 0x26f   :  { %254 = vsyncpa [#allocation5], 1 }

</bundles_post_ra>
